<compile_context>
chip_gen: v5e
topology: v5e:2x2
jax: 0.10.0
libtpu: 0.0.40
codegen_flags: <defaults>
</compile_context>

<pallas_src>
import jax
import jax.numpy as jnp
from jax import lax
from jax.experimental import pallas as pl
from jax.experimental.pallas import tpu as pltpu


def _projection_kernel(x_ref, w_ref, o_ref):
    # x_ref: (tm, K), w_ref: (N, K)  ->  o_ref: (tm, N), contracting over K.
    o_ref[...] = lax.dot_general(
        x_ref[...],
        w_ref[...],
        dimension_numbers=(((1,), (1,)), ((), ())),  # x[.,k] * w[.,k]
        preferred_element_type=jnp.float32,
    ).astype(o_ref.dtype)


def projection_matrix_forward(x, weight, *, tm=None):
    """y = x @ weight.T  (weight: (output_dim, input_dim), as in nn.Linear)."""
    B, K = x.shape
    N, K2 = weight.shape
    assert K == K2, "input_dim mismatch"

    # Row tiling over the batch: single block when B is small (the common case
    # for this module), otherwise split B into tm-row tiles ("parallel" axis).
    if tm is None or tm >= B or B % tm != 0:
        tm = B
    grid = (B // tm,)

    cost = pl.CostEstimate(
        flops=2 * B * K * N,
        transcendentals=0,
        bytes_accessed=x.dtype.itemsize * (B * K + B * N)
        + weight.dtype.itemsize * (N * K),
    )

    return pl.pallas_call(
        _projection_kernel,
        out_shape=jax.ShapeDtypeStruct((B, N), x.dtype),
        grid_spec=pltpu.PrefetchScalarGridSpec(
            num_scalar_prefetch=0,
            grid=grid,
            in_specs=[
                pl.BlockSpec((tm, K), lambda i: (i, 0)),  # rows of x
                pl.BlockSpec((N, K), lambda i: (0, 0)),   # full weight, native (N, K)
            ],
            out_specs=pl.BlockSpec((tm, N), lambda i: (i, 0)),
        ),
        compiler_params=pltpu.CompilerParams(
            dimension_semantics=("parallel",),  # rows are independent
        ),
        cost_estimate=cost,
    )(x, weight)


if __name__ == "__main__":
    input_dim = 768
    output_dim = 32
    batch = 8

    key = jax.random.PRNGKey(0)
    kx, kw = jax.random.split(key)

    # Deterministic synthetic parameters (nn.Linear weight shape: (out, in)).
    x = jax.random.normal(kx, (batch, input_dim), dtype=jnp.float32)
    bound = 1.0 / (input_dim ** 0.5)  # mimic nn.Linear's uniform init range
    weight = jax.random.uniform(
        kw, (output_dim, input_dim), dtype=jnp.float32, minval=-bound, maxval=bound
    )

    y = projection_matrix_forward(x, weight)
    y = jax.block_until_ready(y)

    # Reference check against plain JAX matmul (nn.Linear semantics).
    y_ref = x @ weight.T
    assert y.shape == (batch, output_dim)
    assert jnp.allclose(y, y_ref, atol=1e-5, rtol=1e-5)

    print("KERNEL_OK")
</pallas_src>

<mosaic_0001>
module attributes {stable_mosaic.version = 11 : i64} {
  func.func @_projection_kernel(%arg0: i32, %arg1: memref<8x768xf32, #tpu.memory_space<vmem>>, %arg2: memref<32x768xf32, #tpu.memory_space<vmem>>, %arg3: memref<8x32xf32, #tpu.memory_space<vmem>>) attributes {dimension_semantics = [#tpu.dimension_semantics<parallel>], iteration_bounds = array<i64: 1>, scalar_prefetch = 0 : i64, scratch_operands = 0 : i64, tpu.core_type = #tpu.core_type<tc>, window_params = [{transform_indices = @transform_0, window_bounds = array<i64: 8, 768>}, {pipeline_mode = #tpu.pipeline_mode<synchronous>, transform_indices = @transform_1, window_bounds = array<i64: 32, 768>}, {transform_indices = @transform_2, window_bounds = array<i64: 8, 32>}]} {
    %c0 = arith.constant 0 : index
    %c0_0 = arith.constant 0 : index
    %0 = vector.load %arg1[%c0, %c0_0] : memref<8x768xf32, #tpu.memory_space<vmem>>, vector<8x768xf32>
    %c0_1 = arith.constant 0 : index
    %c0_2 = arith.constant 0 : index
    %1 = vector.load %arg2[%c0_1, %c0_2] : memref<32x768xf32, #tpu.memory_space<vmem>>, vector<32x768xf32>
    %cst = arith.constant dense<0.000000e+00> : vector<8x32xf32>
    %2 = tpu.matmul %0, %1, %cst {dimension_numbers = #tpu.dot_dimension_numbers<[1], [1], [0], [0], [0, 0, 1, 0], [], []>} : vector<8x768xf32>, vector<32x768xf32>, vector<8x32xf32> -> vector<8x32xf32>
    %c0_3 = arith.constant 0 : index
    %c0_4 = arith.constant 0 : index
    %3 = vector.load %arg3[%c0_3, %c0_4] : memref<8x32xf32, #tpu.memory_space<vmem>>, vector<8x32xf32>
    tpu.vector_store %arg3[%c0_3, %c0_4], %2 {strides = array<i32>} : memref<8x32xf32, #tpu.memory_space<vmem>>, vector<8x32xf32>,
    return
  }
  func.func @transform_0(%arg0: i32) -> (i32, i32) {
    %c0_i32 = arith.constant 0 : i32
    %c0_i32_0 = arith.constant 0 : i32
    return %arg0, %c0_i32 : i32, i32
  }
  func.func @transform_1(%arg0: i32) -> (i32, i32) {
    %c0_i32 = arith.constant 0 : i32
    %c0_i32_0 = arith.constant 0 : i32
    %c0_i32_1 = arith.constant 0 : i32
    return %c0_i32, %c0_i32_0 : i32, i32
  }
  func.func @transform_2(%arg0: i32) -> (i32, i32) {
    %c0_i32 = arith.constant 0 : i32
    %c0_i32_0 = arith.constant 0 : i32
    return %arg0, %c0_i32 : i32, i32
  }
}

</mosaic_0001>

<bundles_post_ra>
// kernel: tpu_custom_call.1
= control target key start
LH: loop header
LB: loop body
LE: loop exit
PB: predicated region body
PF: predicated region fallthrough
CT: control target
= control target key end

     0   :  { %7 = vsyncpa [#allocation3], 0  ;;  %s324_s0 = inlined_call_operand.hbm [shape: f32[8,768], index: 0, kind: input, shape index: {}]   ;;  %s325_s1 = inlined_call_operand.hbm [shape: f32[32,768], index: 1, kind: input, shape index: {}]   ;;  %s326_s2 = inlined_call_operand.hbm [shape: f32[8,32], index: 2, kind: output, shape index: {}]  }
   0x1   :  { %8 = vsyncpa [#allocation6], 0 }
   0x2   :  { %9 = vsyncpa [#allocation4], 0  ;;  %s15_s11 = sshll.u32 %s324_s0, 4  ;;  %s295_s12 = smov [#allocation2]   ;;  %s16_s11 = int_to_ptr.hbm [resolvable:$true] %s15_s11 }
   0x3   :  { %s17_s13 = sshll.u32 %s295_s12, 4  ;;  %s25_s16 = sshll.u32 %s325_s1, 4  ;;  %s18_s13 = int_to_ptr.vmem [resolvable:$true] %s17_s13  ;;  %s26_s16 = int_to_ptr.hbm [resolvable:$true] %s25_s16 }
   0x4   :  { %20 = dma.hbm_to_vmem [thread:$0]  %s16_s11, 768, %s18_s13, [#allocation3]  }
   0x5   :  { %s296_s17 = smov [#allocation5]   ;;  %s297_s19 = smov 768  }
   0x6   :  { %s27_s18 = sshll.u32 %s296_s17, 4  ;;  %s298_s20 = smov 48   ;;  %s28_s18 = int_to_ptr.vmem [resolvable:$true] %s27_s18 }
   0x7   :  { %33 = dma.hbm_to_vmem [thread:$0]  %s26_s16, 3072, %s28_s18, [#allocation6], %s297_s19, %s297_s19, %s298_s20  }
   0x8   :  { %289 = dma.done.wait [#allocation3], 768  }
   0x9   :  { %290 = vsyncadd [#allocation3], 4294966528 }
   0xa   :  { %291 = dma.done.wait [#allocation6], 3072  }
   0xb   :  { %292 = vsyncadd [#allocation6], 4294964224  ;;  %v66_v0 = vld [vmem:[#allocation5 + $0x90] sm:$0xff]  ;;  %v68_v1 = vld [vmem:[#allocation5 + $0xa0] sm:$0xff]  ;;  %s299_s0 = smov [#allocation7]   ;;  %s201_s23 = sshll.u32 %s326_s2, 4  ;;  %s202_s23 = int_to_ptr.hbm [resolvable:$true] %s201_s23 }
   0xc   :  { %v67_v2 = vld [vmem:[#allocation5 + $0x98] sm:$0xff]  ;;  %84 = vmatpush.xpose.msra.mxu0 %v66_v0  ;;  %124 = vmatpush.xpose.msra.mxu2 %v68_v1  ;;  %v69_v3 = vld [vmem:[#allocation5 + $0xa8] sm:$0xff]  ;;  %v60_v4 = vld [vmem:[#allocation5 + $0x60] sm:$0xff]  ;;  %s199_s1 = sshll.u32 %s299_s0, 4  ;;  %vm192_vm0 = vcmask 261120   ;;  %s200_s1 = int_to_ptr.vmem [resolvable:$true] %s199_s1 }
   0xd   :  { %104 = vmatpush.xpose.msra.mxu1 %v67_v2  ;;  %144 = vmatpush.xpose.msra.mxu3 %v69_v3  ;;  %v62_v5 = vld [vmem:[#allocation5 + $0x70] sm:$0xff]  ;;  %v61_v6 = vld [vmem:[#allocation5 + $0x68] sm:$0xff]  ;;  %v63_v7 = vld [vmem:[#allocation5 + $0x78] sm:$0xff] }
   0xe   :  { %v54_v8 = vld [vmem:[#allocation5 + $0x30] sm:$0xff]  ;;  %v56_v9 = vld [vmem:[#allocation5 + $0x40] sm:$0xff]  ;;  %v55_v10 = vld [vmem:[#allocation5 + $0x38] sm:$0xff] }
   0xf   :  { %v57_v11 = vld [vmem:[#allocation5 + $0x48] sm:$0xff]  ;;  %v48_v12 = vld [vmem:[#allocation5] sm:$0xff]  ;;  %v50_v13 = vld [vmem:[#allocation5 + $0x10] sm:$0xff] }
  0x10   :  { %85 = vmatpush.xpose.msra.mxu0 %v60_v4  ;;  %125 = vmatpush.xpose.msra.mxu2 %v62_v5  ;;  %v70_v14 = vld [vmem:[#allocation5 + $0xb0] sm:$0xff]  ;;  %v49_v15 = vld [vmem:[#allocation5 + $0x8] sm:$0xff]  ;;  %v51_v16 = vld [vmem:[#allocation5 + $0x18] sm:$0xff] }
  0x11   :  { %105 = vmatpush.xpose.msra.mxu1 %v61_v6  ;;  %145 = vmatpush.xpose.msra.mxu3 %v63_v7  ;;  %v71_v17 = vld [vmem:[#allocation5 + $0xb8] sm:$0xff]  ;;  %v44_v18 = vld [vmem:[#allocation2 + $0x10] sm:$0xff]  ;;  %v42_v19 = vld [vmem:[#allocation2] sm:$0xff] }
  0x12   :  { %v43_v20 = vld [vmem:[#allocation2 + $0x8] sm:$0xff]  ;;  %v64_v21 = vld [vmem:[#allocation5 + $0x80] sm:$0xff]  ;;  %v45_v22 = vld [vmem:[#allocation2 + $0x18] sm:$0xff] }
  0x13   :  { %v65_v23 = vld [vmem:[#allocation5 + $0x88] sm:$0xff]  ;;  %v58_v24 = vld [vmem:[#allocation5 + $0x50] sm:$0xff]  ;;  %v59_v25 = vld [vmem:[#allocation5 + $0x58] sm:$0xff] }
  0x14   :  { %86 = vmatpush.xpose.msra.mxu0 %v54_v8  ;;  %126 = vmatpush.xpose.msra.mxu2 %v56_v9  ;;  %v52_v26 = vld [vmem:[#allocation5 + $0x20] sm:$0xff]  ;;  %v53_v27 = vld [vmem:[#allocation5 + $0x28] sm:$0xff]  ;;  %v46_v28 = vld [vmem:[#allocation2 + $0x20] sm:$0xff] }
  0x15   :  { %106 = vmatpush.xpose.msra.mxu1 %v55_v10  ;;  %146 = vmatpush.xpose.msra.mxu3 %v57_v11  ;;  %v47_v29 = vld [vmem:[#allocation2 + $0x28] sm:$0xff] }
  0x18   :  { %87 = vmatpush.xpose.msra.mxu0 %v48_v12  ;;  %127 = vmatpush.xpose.msra.mxu2 %v50_v13 }
  0x19   :  { %107 = vmatpush.xpose.msra.mxu1 %v49_v15  ;;  %147 = vmatpush.xpose.msra.mxu3 %v51_v16 }
  0x1b   :  { %128 = vmatmul.f32.vlgmr.msra.gmra.mxu2 %v44_v18  ;;  %88 = vmatmul.f32.vlgmr.msra.gmra.mxu0 %v42_v19 }
  0x1c   :  { %164 = vmatpush.xpose.msrb.mxu0 %v70_v14  ;;  %108 = vmatmul.f32.vlgmr.msra.gmra.mxu1 %v43_v20 }
  0x1d   :  { %184 = vmatpush.xpose.msrb.mxu1 %v71_v17  ;;  %148 = vmatmul.f32.vlgmr.msra.gmra.mxu3 %v45_v22 }
  0x20   :  { %165 = vmatpush.xpose.msrb.mxu0 %v64_v21 }
  0x21   :  { %185 = vmatpush.xpose.msrb.mxu1 %v65_v23 }
  0x24   :  { %166 = vmatpush.xpose.msrb.mxu0 %v58_v24 }
  0x25   :  { %186 = vmatpush.xpose.msrb.mxu1 %v59_v25 }
  0x28   :  { %167 = vmatpush.xpose.msrb.mxu0 %v52_v26 }
  0x29   :  { %187 = vmatpush.xpose.msrb.mxu1 %v53_v27 }
  0x2b   :  { %168 = vmatmul.f32.vlgmr.msrb.gmra.mxu0 %v46_v28 }
  0x2c   :  { %188 = vmatmul.f32.vlgmr.msrb.gmra.mxu1 %v47_v29 }
  0x98   :  { %v89_v30 = vpop.f32.mrf.mxu0 }
  0x99   :  { %v109_v31 = vpop.f32.mrf.mxu1 }
  0x9a   :  { %v110_v32 = vadd.f32 %v109_v31, %v89_v30 }
  0x9e   :  { %v129_v33 = vpop.f32.mrf.mxu2 }
  0x9f   :  { %v130_v34 = vadd.f32 %v129_v33, %v110_v32 }
  0xa0   :  { %v149_v35 = vpop.f32.mrf.mxu3 }
  0xa1   :  { %v150_v36 = vadd.f32 %v149_v35, %v130_v34 }
  0xa8   :  { %v169_v37 = vpop.f32.mrf.mxu0 }
  0xa9   :  { %v170_v38 = vadd.f32 %v169_v37, %v150_v36  ;;  %v189_v39 = vpop.f32.mrf.mxu1 }
  0xab   :  { %v190_v40 = vadd.f32 %v189_v39, %v170_v38 }
  0xad   :  { %193 = vst.msk [vmem:[#allocation7] sm:$0xff] %vm192_vm0, %v190_v40 }
  0xae   :  { %204 = dma.vmem_to_hbm [thread:$0]  %s200_s1, 128, %s202_s23, [#allocation4]  }
  0xaf   :  { %293 = dma.done.wait [#allocation4], 128  }
  0xb0   :  { %294 = vsyncadd [#allocation4], 4294967168 }
  0xb1   :  { %209 = vsyncpa [#allocation3], 1 }
  0xb2   :  { %210 = vsyncpa [#allocation6], 1 }
  0xb3   :  { %211 = vsyncpa [#allocation4], 1 }

</bundles_post_ra>
